<compile_context>
chip_gen: v5e
topology: v5e:2x2
jax: 0.10.0
libtpu: 0.0.40
codegen_flags: <defaults>
</compile_context>

<pallas_src>
import jax
import jax.numpy as jnp
from jax import lax
from jax.experimental import pallas as pl
from jax.experimental.pallas import tpu as pltpu

_MASK_VALUE = -1e30     # exp(mask - m) underflows to 0; never produces NaN
_NORM_EPS = 1e-12       # clamp on squared norms (~ torch cosine-similarity eps)


def _round_up(x, m):
    return ((x + m - 1) // m) * m


def _l2_normalize(x):
    x = x.astype(jnp.float32)
    return x * lax.rsqrt(jnp.maximum(jnp.sum(x * x, -1, keepdims=True), _NORM_EPS))


def _vmem_budget_bytes():
    """(tile budget, vmem_limit_bytes) per TPU generation; conservative fallback."""
    cap = None
    try:
        cap = getattr(pltpu.get_tpu_info(), "vmem_capacity_bytes", None)
    except Exception:
        cap = None
    if cap is not None and cap >= (100 << 20):      # v5e / v6e: 128 MiB physical VMEM
        return 80 << 20, 100 << 20
    return 40 << 20, 48 << 20                       # v7x (64 MiB physical) or unknown


def _make_infonce_kernel(tq, tk, n_batch, n_keys, inv_temp):
    # NOTE: every closed-over value here is a Python int/float so it lowers as a
    # literal (a jnp array constant would trigger "kernel captures constants").
    inv_temp = float(inv_temp)

    def kernel(q_ref, k_ref, loss_ref, m_scr, l_scr, pos_scr):
        kj = pl.program_id(1)

        @pl.when(kj == 0)
        def _():
            m_scr[...] = jnp.full(m_scr.shape, -jnp.inf, m_scr.dtype)
            l_scr[...] = jnp.zeros(l_scr.shape, l_scr.dtype)
            pos_scr[...] = jnp.zeros(pos_scr.shape, pos_scr.dtype)

        # Inputs are already L2-normalized bf16; MXU dot with f32 accumulation.
        s = lax.dot_general(q_ref[...], k_ref[...], (((1,), (1,)), ((), ())),
                            preferred_element_type=jnp.float32) * inv_temp   # (tq, tk)

        row0 = pl.program_id(0) * tq          # first global query row of this tile
        col0 = kj * tk                        # first global key column of this tile

        # Scalar overlap tests: the positive diagonal and the q.q self diagonal each
        # intersect at most one key tile per query tile, and padding only hits the
        # last key tile -> gate all per-element iota/compare/select work off the
        # fast path (the kernel is VALU-bound at moderate D).
        has_pos = jnp.logical_and(col0 < row0 + tq, col0 + tk > row0)
        has_self = jnp.logical_and(col0 < row0 + n_batch + tq,
                                   col0 + tk > row0 + n_batch)
        has_pad = (col0 + tk) > n_keys
        slow = jnp.logical_or(jnp.logical_or(has_pos, has_self), has_pad)

        def online_lse(sv):
            m_prev = m_scr[...]
            m_new = jnp.maximum(m_prev, jnp.max(sv, -1, keepdims=True))
            l_scr[...] = (jnp.exp(m_prev - m_new) * l_scr[...]
                          + jnp.sum(jnp.exp(sv - m_new), -1, keepdims=True))
            m_scr[...] = m_new

        @pl.when(jnp.logical_not(slow))
        def _():                              # fast path: no masks, no positive
            online_lse(s)

        @pl.when(slow)
        def _():                              # slow path: at most ~2 key tiles / query tile
            row_g = row0 + lax.broadcasted_iota(jnp.int32, (tq, tk), 0)
            col_g = col0 + lax.broadcasted_iota(jnp.int32, (tq, tk), 1)
            # Positive logit of row i (== cos(q_i, k_i)/t) lives at key column i.
            pos_scr[...] += jnp.sum(jnp.where(col_g == row_g, s, 0.0), -1, keepdims=True)
            # Drop the q.q self column (key index n_batch + i) and padded key columns.
            invalid = (col_g == row_g + n_batch) | (col_g >= n_keys)
            online_lse(jnp.where(invalid, _MASK_VALUE, s))

        @pl.when(kj == pl.num_programs(1) - 1)
        def _():
            loss_ref[...] = (m_scr[...] + jnp.log(l_scr[...])) - pos_scr[...]

    return kernel


def infonce_forward(q, k, projected_q=None, projected_k=None,
                    predicted_q=None, predicted_k=None, m=None,
                    *, temperature=0.2, block_q=None, block_k=None):
    """Pallas TPU forward of InfoNCE.forward. Returns a float32 scalar loss.

    predicted_q / predicted_k are accepted but unused, exactly like the torch module.
    """
    if projected_q is not None and projected_k is not None:
        q, k = projected_q, projected_k
    # predicted_q / predicted_k are intentionally ignored (matches the torch forward).

    B, D = q.shape
    key_rows = [k, q] if m is None else [k, q, m]
    keys = jnp.concatenate(key_rows, axis=0)          # [Nk, D]
    n_keys = keys.shape[0]

    # Pre-normalize once in XLA (f32 math) and feed the kernel bf16 operands:
    #  * key normalization would otherwise be repeated once per query tile,
    #  * bf16 halves HBM traffic and runs at native MXU rate (biggest win on v5e).
    qn = _l2_normalize(q).astype(jnp.bfloat16)
    kn = _l2_normalize(keys).astype(jnp.bfloat16)

    # ---- tile selection -------------------------------------------------------
    # tq divides the dominant key-matrix HBM re-read traffic -> default large.
    # tk is the lane axis of the (tq, tk) score tile -> multiple of 128 lanes.
    tq = _round_up(block_q, 8) if block_q else min(512, _round_up(B, 8))
    tk = _round_up(block_k, 128) if block_k else min(512, _round_up(n_keys, 128))

    budget, vmem_limit = _vmem_budget_bytes()

    def _vmem_est(a, b):
        return (2 * a * D * 2                 # q tile, bf16, double-buffered
                + 2 * b * D * 2               # key tile, bf16, double-buffered
                + 2 * a * b * 4               # f32 score tile + exp intermediate
                + 5 * a * 128 * 4)            # (tq,1) scratches + out blocks, lane-padded

    while _vmem_est(tq, tk) > budget and tk > 128:     # shrink tk first (keeps tq large)
        tk = max(128, _round_up(tk // 2, 128))
    while _vmem_est(tq, tk) > budget and tq > 8:
        tq = max(8, _round_up(tq // 2, 8))

    b_pad = _round_up(B, tq)
    nk_pad = _round_up(n_keys, tk)
    if b_pad != B:
        qn = jnp.pad(qn, ((0, b_pad - B), (0, 0)))      # padded rows are exact zeros
    if nk_pad != n_keys:
        kn = jnp.pad(kn, ((0, nk_pad - n_keys), (0, 0)))

    grid = (b_pad // tq, nk_pad // tk)
    kernel = _make_infonce_kernel(tq, tk, B, n_keys, 1.0 / float(temperature))

    cost = pl.CostEstimate(
        flops=int(2 * b_pad * nk_pad * D + 10 * b_pad * nk_pad),
        transcendentals=int(b_pad * nk_pad + b_pad * grid[1] + b_pad),
        bytes_accessed=int(b_pad * D * 2                  # q read once per query tile
                           + nk_pad * D * 2 * grid[0]     # keys re-read per query tile
                           + b_pad * 4),
    )

    # Note: for very small D / very large Nk one could add
    # pipeline_mode=pl.Buffered(3) on the key BlockSpec to hide exposed DMA latency.
    per_row = pl.pallas_call(
        kernel,
        out_shape=jax.ShapeDtypeStruct((b_pad, 1), jnp.float32),
        grid_spec=pltpu.PrefetchScalarGridSpec(
            num_scalar_prefetch=0,
            grid=grid,
            in_specs=[
                pl.BlockSpec((tq, D), lambda qi, kj: (qi, 0)),   # query tile (resident over kj)
                pl.BlockSpec((tk, D), lambda qi, kj: (kj, 0)),   # key tile
            ],
            out_specs=pl.BlockSpec((tq, 1), lambda qi, kj: (qi, 0)),
            scratch_shapes=[pltpu.VMEM((tq, 1), jnp.float32)] * 3,   # m, l, pos
        ),
        compiler_params=pltpu.CompilerParams(
            dimension_semantics=("parallel", "arbitrary"),
            vmem_limit_bytes=vmem_limit,
        ),
        cost_estimate=cost,
    )(qn, kn)

    # Tiny final mean over the true batch rows; kept in XLA so padded query rows
    # are dropped and the query-tile grid axis can stay megacore-parallel.
    return jnp.mean(per_row[:B, 0])


def _reference_infonce(q, k, temperature, m=None):
    """Plain-JAX reference mirroring the torch module (cosine similarity / temp)."""
    def cos_sim(a, b):
        a = a / jnp.maximum(jnp.linalg.norm(a, axis=-1, keepdims=True), 1e-6)
        b = b / jnp.maximum(jnp.linalg.norm(b, axis=-1, keepdims=True), 1e-6)
        return jnp.matmul(a, b.T, precision=lax.Precision.HIGHEST) / temperature

    B = q.shape[0]
    sim_qk = cos_sim(q, k)                               # [B, B]
    sim_qq = cos_sim(q, q)                               # [B, B]
    logits = jnp.concatenate([sim_qk, sim_qq], axis=1)   # [B, 2B]
    rows = jnp.arange(B)[:, None]
    cols = jnp.arange(2 * B)[None, :]
    logits = jnp.where(cols == rows + B, -jnp.inf, logits)   # drop q.q diagonal
    if m is not None:
        logits = jnp.concatenate([logits, cos_sim(q, m)], axis=1)
    lse = jax.nn.logsumexp(logits, axis=-1)
    return jnp.mean(lse - jnp.diag(sim_qk))


if __name__ == "__main__":
    key = jax.random.PRNGKey(0)
    kq, kk, km, kp1, kp2, kq2, kk2, km2 = jax.random.split(key, 8)

    temperature = 0.2
    B, D, M = 8, 32, 4

    q = jax.random.normal(kq, (B, D), dtype=jnp.float32)
    k = jax.random.normal(kk, (B, D), dtype=jnp.float32)
    mbank = jax.random.normal(km, (M, D), dtype=jnp.float32)
    projected_q = jax.random.normal(kp1, (B, D), dtype=jnp.float32)
    projected_k = jax.random.normal(kp2, (B, D), dtype=jnp.float32)

    # bf16 MXU operands + f32 accumulation -> loose-ish tolerance.
    tol = dict(rtol=2e-2, atol=2e-2)

    # 1) plain q / k path (single-tile grid, key padding active)
    loss = jax.block_until_ready(infonce_forward(q, k, temperature=temperature))
    ref = _reference_infonce(q, k, temperature)
    assert jnp.isfinite(loss), loss
    assert jnp.allclose(loss, ref, **tol), (loss, ref)

    # 2) projected_q / projected_k override + memory bank m
    loss_m = jax.block_until_ready(
        infonce_forward(q, k, projected_q=projected_q, projected_k=projected_k,
                        m=mbank, temperature=temperature))
    ref_m = _reference_infonce(projected_q, projected_k, temperature, m=mbank)
    assert jnp.allclose(loss_m, ref_m, **tol), (loss_m, ref_m)

    # 3) multi-tile grid: several query tiles, several key tiles, query padding
    #    (80 -> 96 rows) and key padding (192 -> 256 cols) -> exercises the online
    #    logsumexp accumulation and the gated fast/slow paths.
    B3, D3, M3 = 80, 64, 32
    q3 = jax.random.normal(kq2, (B3, D3), dtype=jnp.float32)
    k3 = jax.random.normal(kk2, (B3, D3), dtype=jnp.float32)
    m3 = jax.random.normal(km2, (M3, D3), dtype=jnp.float32)
    loss3 = jax.block_until_ready(
        infonce_forward(q3, k3, m=m3, temperature=temperature, block_q=32, block_k=128))
    ref3 = _reference_infonce(q3, k3, temperature, m=m3)
    assert jnp.allclose(loss3, ref3, **tol), (loss3, ref3)

    print("KERNEL_OK")
</pallas_src>

<mosaic_0001>
module attributes {stable_mosaic.version = 11 : i64} {
  func.func @kernel(%arg0: i32, %arg1: i32, %arg2: memref<8x32xbf16, #tpu.memory_space<vmem>>, %arg3: memref<128x32xbf16, #tpu.memory_space<vmem>>, %arg4: memref<8x1xf32, #tpu.memory_space<vmem>>, %arg5: memref<8x1xf32, #tpu.memory_space<vmem>>, %arg6: memref<8x1xf32, #tpu.memory_space<vmem>>, %arg7: memref<8x1xf32, #tpu.memory_space<vmem>>) attributes {dimension_semantics = [#tpu.dimension_semantics<parallel>, #tpu.dimension_semantics<arbitrary>], iteration_bounds = array<i64: 1, 1>, scalar_prefetch = 0 : i64, scratch_operands = 3 : i64, tpu.core_type = #tpu.core_type<tc>, window_params = [{transform_indices = @transform_0, window_bounds = array<i64: 8, 32>}, {transform_indices = @transform_1, window_bounds = array<i64: 128, 32>}, {transform_indices = @transform_2, window_bounds = array<i64: 8, 1>}]} {
    %c0_i32 = arith.constant 0 : i32
    %0 = arith.cmpi eq, %arg1, %c0_i32 : i32
    %1 = arith.extui %0 : i1 to i32
    %c0_i32_0 = arith.constant 0 : i32
    %2 = arith.cmpi ne, %1, %c0_i32_0 : i32
    scf.if %2 {
      %cst_16 = arith.constant 0xFF800000 : f32
      %34 = vector.broadcast %cst_16 : f32 to vector<8x1xf32>
      %c0_17 = arith.constant 0 : index
      %c0_18 = arith.constant 0 : index
      %35 = vector.load %arg5[%c0_17, %c0_18] : memref<8x1xf32, #tpu.memory_space<vmem>>, vector<8x1xf32>
      tpu.vector_store %arg5[%c0_17, %c0_18], %34 {strides = array<i32>} : memref<8x1xf32, #tpu.memory_space<vmem>>, vector<8x1xf32>,
      %cst_19 = arith.constant 0.000000e+00 : f32
      %36 = vector.broadcast %cst_19 : f32 to vector<8x1xf32>
      %c0_20 = arith.constant 0 : index
      %c0_21 = arith.constant 0 : index
      %37 = vector.load %arg6[%c0_20, %c0_21] : memref<8x1xf32, #tpu.memory_space<vmem>>, vector<8x1xf32>
      tpu.vector_store %arg6[%c0_20, %c0_21], %36 {strides = array<i32>} : memref<8x1xf32, #tpu.memory_space<vmem>>, vector<8x1xf32>,
      %cst_22 = arith.constant 0.000000e+00 : f32
      %38 = vector.broadcast %cst_22 : f32 to vector<8x1xf32>
      %c0_23 = arith.constant 0 : index
      %c0_24 = arith.constant 0 : index
      %39 = vector.load %arg7[%c0_23, %c0_24] : memref<8x1xf32, #tpu.memory_space<vmem>>, vector<8x1xf32>
      tpu.vector_store %arg7[%c0_23, %c0_24], %38 {strides = array<i32>} : memref<8x1xf32, #tpu.memory_space<vmem>>, vector<8x1xf32>,
    } else {
    }
    %c0 = arith.constant 0 : index
    %c0_1 = arith.constant 0 : index
    %3 = vector.load %arg2[%c0, %c0_1] : memref<8x32xbf16, #tpu.memory_space<vmem>>, vector<8x32xbf16>
    %c0_2 = arith.constant 0 : index
    %c0_3 = arith.constant 0 : index
    %4 = vector.load %arg3[%c0_2, %c0_3] : memref<128x32xbf16, #tpu.memory_space<vmem>>, vector<128x32xbf16>
    %cst = arith.constant dense<0.000000e+00> : vector<8x128xf32>
    %5 = tpu.matmul %3, %4, %cst {dimension_numbers = #tpu.dot_dimension_numbers<[1], [1], [0], [0], [0, 0, 1, 0], [], []>} : vector<8x32xbf16>, vector<128x32xbf16>, vector<8x128xf32> -> vector<8x128xf32>
    %cst_4 = arith.constant 5.000000e+00 : f32
    %6 = vector.broadcast %cst_4 : f32 to vector<8x128xf32>
    %7 = arith.mulf %5, %6 : vector<8x128xf32>
    %c8_i32 = arith.constant 8 : i32
    %8 = arith.muli %arg0, %c8_i32 : i32
    %c128_i32 = arith.constant 128 : i32
    %9 = arith.muli %arg1, %c128_i32 : i32
    %c8_i32_5 = arith.constant 8 : i32
    %10 = arith.addi %8, %c8_i32_5 : i32
    %11 = arith.cmpi slt, %9, %10 : i32
    %c128_i32_6 = arith.constant 128 : i32
    %12 = arith.addi %9, %c128_i32_6 : i32
    %13 = arith.cmpi sgt, %12, %8 : i32
    %14 = arith.andi %11, %13 : i1
    %c8_i32_7 = arith.constant 8 : i32
    %15 = arith.addi %8, %c8_i32_7 : i32
    %c8_i32_8 = arith.constant 8 : i32
    %16 = arith.addi %15, %c8_i32_8 : i32
    %17 = arith.cmpi slt, %9, %16 : i32
    %c128_i32_9 = arith.constant 128 : i32
    %18 = arith.addi %9, %c128_i32_9 : i32
    %c8_i32_10 = arith.constant 8 : i32
    %19 = arith.addi %8, %c8_i32_10 : i32
    %20 = arith.cmpi sgt, %18, %19 : i32
    %21 = arith.andi %17, %20 : i1
    %c128_i32_11 = arith.constant 128 : i32
    %22 = arith.addi %9, %c128_i32_11 : i32
    %c16_i32 = arith.constant 16 : i32
    %23 = arith.cmpi sgt, %22, %c16_i32 : i32
    %24 = arith.ori %14, %21 : i1
    %25 = arith.ori %24, %23 : i1
    %true = arith.constant true
    %26 = arith.xori %25, %true : i1
    %27 = arith.extui %26 : i1 to i32
    %c0_i32_12 = arith.constant 0 : i32
    %28 = arith.cmpi ne, %27, %c0_i32_12 : i32
    scf.if %28 {
      %c0_16 = arith.constant 0 : index
      %c0_17 = arith.constant 0 : index
      %34 = vector.load %arg5[%c0_16, %c0_17] : memref<8x1xf32, #tpu.memory_space<vmem>>, vector<8x1xf32>
      %cst_18 = arith.constant dense<0xFF800000> : vector<8xf32>
      %35 = vector.multi_reduction <maximumf>, %7, %cst_18 [1] : vector<8x128xf32> to vector<8xf32>
      %36 = vector.shape_cast %35 : vector<8xf32> to vector<8x1xf32>
      %37 = arith.maximumf %34, %36 : vector<8x1xf32>
      %38 = arith.subf %34, %37 : vector<8x1xf32>
      %39 = math.exp %38 : vector<8x1xf32>
      %c0_19 = arith.constant 0 : index
      %c0_20 = arith.constant 0 : index
      %40 = vector.load %arg6[%c0_19, %c0_20] : memref<8x1xf32, #tpu.memory_space<vmem>>, vector<8x1xf32>
      %41 = arith.mulf %39, %40 : vector<8x1xf32>
      %42 = vector.broadcast %37 : vector<8x1xf32> to vector<8x128xf32>
      %43 = arith.subf %7, %42 : vector<8x128xf32>
      %44 = math.exp %43 : vector<8x128xf32>
      %cst_21 = arith.constant dense<0.000000e+00> : vector<8xf32>
      %45 = vector.multi_reduction <add>, %44, %cst_21 [1] : vector<8x128xf32> to vector<8xf32>
      %46 = vector.shape_cast %45 : vector<8xf32> to vector<8x1xf32>
      %47 = arith.addf %41, %46 : vector<8x1xf32>
      %c0_22 = arith.constant 0 : index
      %c0_23 = arith.constant 0 : index
      %48 = vector.load %arg6[%c0_22, %c0_23] : memref<8x1xf32, #tpu.memory_space<vmem>>, vector<8x1xf32>
      tpu.vector_store %arg6[%c0_22, %c0_23], %47 {strides = array<i32>} : memref<8x1xf32, #tpu.memory_space<vmem>>, vector<8x1xf32>,
      %c0_24 = arith.constant 0 : index
      %c0_25 = arith.constant 0 : index
      %49 = vector.load %arg5[%c0_24, %c0_25] : memref<8x1xf32, #tpu.memory_space<vmem>>, vector<8x1xf32>
      tpu.vector_store %arg5[%c0_24, %c0_25], %37 {strides = array<i32>} : memref<8x1xf32, #tpu.memory_space<vmem>>, vector<8x1xf32>,
    } else {
    }
    %29 = arith.extui %25 : i1 to i32
    %c0_i32_13 = arith.constant 0 : i32
    %30 = arith.cmpi ne, %29, %c0_i32_13 : i32
    scf.if %30 {
      %34 = tpu.iota {dimensions = array<i32: 0>} : vector<8x128xi32>
      %35 = vector.broadcast %8 : i32 to vector<8x128xi32>
      %36 = arith.addi %35, %34 : vector<8x128xi32>
      %37 = tpu.iota {dimensions = array<i32: 1>} : vector<8x128xi32>
      %38 = vector.broadcast %9 : i32 to vector<8x128xi32>
      %39 = arith.addi %38, %37 : vector<8x128xi32>
      %c0_16 = arith.constant 0 : index
      %c0_17 = arith.constant 0 : index
      %40 = vector.load %arg7[%c0_16, %c0_17] : memref<8x1xf32, #tpu.memory_space<vmem>>, vector<8x1xf32>
      %41 = arith.cmpi eq, %39, %36 : vector<8x128xi32>
      %cst_18 = arith.constant 0.000000e+00 : f32
      %42 = vector.broadcast %cst_18 : f32 to vector<8x128xf32>
      %43 = arith.select %41, %7, %42 : vector<8x128xi1>, vector<8x128xf32>
      %cst_19 = arith.constant dense<0.000000e+00> : vector<8xf32>
      %44 = vector.multi_reduction <add>, %43, %cst_19 [1] : vector<8x128xf32> to vector<8xf32>
      %45 = vector.shape_cast %44 : vector<8xf32> to vector<8x1xf32>
      %46 = arith.addf %40, %45 : vector<8x1xf32>
      %c0_20 = arith.constant 0 : index
      %c0_21 = arith.constant 0 : index
      %47 = vector.load %arg7[%c0_20, %c0_21] : memref<8x1xf32, #tpu.memory_space<vmem>>, vector<8x1xf32>
      tpu.vector_store %arg7[%c0_20, %c0_21], %46 {strides = array<i32>} : memref<8x1xf32, #tpu.memory_space<vmem>>, vector<8x1xf32>,
      %c8_i32_22 = arith.constant 8 : i32
      %48 = vector.broadcast %c8_i32_22 : i32 to vector<8x128xi32>
      %49 = arith.addi %36, %48 : vector<8x128xi32>
      %50 = arith.cmpi eq, %39, %49 : vector<8x128xi32>
      %c16_i32_23 = arith.constant 16 : i32
      %51 = vector.broadcast %c16_i32_23 : i32 to vector<8x128xi32>
      %52 = arith.cmpi sge, %39, %51 : vector<8x128xi32>
      %53 = arith.ori %50, %52 : vector<8x128xi1>
      %cst_24 = arith.constant -1.000000e+30 : f32
      %54 = vector.broadcast %cst_24 : f32 to vector<8x128xf32>
      %55 = arith.select %53, %54, %7 : vector<8x128xi1>, vector<8x128xf32>
      %c0_25 = arith.constant 0 : index
      %c0_26 = arith.constant 0 : index
      %56 = vector.load %arg5[%c0_25, %c0_26] : memref<8x1xf32, #tpu.memory_space<vmem>>, vector<8x1xf32>
      %cst_27 = arith.constant dense<0xFF800000> : vector<8xf32>
      %57 = vector.multi_reduction <maximumf>, %55, %cst_27 [1] : vector<8x128xf32> to vector<8xf32>
      %58 = vector.shape_cast %57 : vector<8xf32> to vector<8x1xf32>
      %59 = arith.maximumf %56, %58 : vector<8x1xf32>
      %60 = arith.subf %56, %59 : vector<8x1xf32>
      %61 = math.exp %60 : vector<8x1xf32>
      %c0_28 = arith.constant 0 : index
      %c0_29 = arith.constant 0 : index
      %62 = vector.load %arg6[%c0_28, %c0_29] : memref<8x1xf32, #tpu.memory_space<vmem>>, vector<8x1xf32>
      %63 = arith.mulf %61, %62 : vector<8x1xf32>
      %64 = vector.broadcast %59 : vector<8x1xf32> to vector<8x128xf32>
      %65 = arith.subf %55, %64 : vector<8x128xf32>
      %66 = math.exp %65 : vector<8x128xf32>
      %cst_30 = arith.constant dense<0.000000e+00> : vector<8xf32>
      %67 = vector.multi_reduction <add>, %66, %cst_30 [1] : vector<8x128xf32> to vector<8xf32>
      %68 = vector.shape_cast %67 : vector<8xf32> to vector<8x1xf32>
      %69 = arith.addf %63, %68 : vector<8x1xf32>
      %c0_31 = arith.constant 0 : index
      %c0_32 = arith.constant 0 : index
      %70 = vector.load %arg6[%c0_31, %c0_32] : memref<8x1xf32, #tpu.memory_space<vmem>>, vector<8x1xf32>
      tpu.vector_store %arg6[%c0_31, %c0_32], %69 {strides = array<i32>} : memref<8x1xf32, #tpu.memory_space<vmem>>, vector<8x1xf32>,
      %c0_33 = arith.constant 0 : index
      %c0_34 = arith.constant 0 : index
      %71 = vector.load %arg5[%c0_33, %c0_34] : memref<8x1xf32, #tpu.memory_space<vmem>>, vector<8x1xf32>
      tpu.vector_store %arg5[%c0_33, %c0_34], %59 {strides = array<i32>} : memref<8x1xf32, #tpu.memory_space<vmem>>, vector<8x1xf32>,
    } else {
    }
    %c0_i32_14 = arith.constant 0 : i32
    %31 = arith.cmpi eq, %arg1, %c0_i32_14 : i32
    %32 = arith.extui %31 : i1 to i32
    %c0_i32_15 = arith.constant 0 : i32
    %33 = arith.cmpi ne, %32, %c0_i32_15 : i32
    scf.if %33 {
      %c0_16 = arith.constant 0 : index
      %c0_17 = arith.constant 0 : index
      %34 = vector.load %arg5[%c0_16, %c0_17] : memref<8x1xf32, #tpu.memory_space<vmem>>, vector<8x1xf32>
      %c0_18 = arith.constant 0 : index
      %c0_19 = arith.constant 0 : index
      %35 = vector.load %arg6[%c0_18, %c0_19] : memref<8x1xf32, #tpu.memory_space<vmem>>, vector<8x1xf32>
      %36 = math.log %35 : vector<8x1xf32>
      %37 = arith.addf %34, %36 : vector<8x1xf32>
      %c0_20 = arith.constant 0 : index
      %c0_21 = arith.constant 0 : index
      %38 = vector.load %arg7[%c0_20, %c0_21] : memref<8x1xf32, #tpu.memory_space<vmem>>, vector<8x1xf32>
      %39 = arith.subf %37, %38 : vector<8x1xf32>
      %c0_22 = arith.constant 0 : index
      %c0_23 = arith.constant 0 : index
      %40 = vector.load %arg4[%c0_22, %c0_23] : memref<8x1xf32, #tpu.memory_space<vmem>>, vector<8x1xf32>
      tpu.vector_store %arg4[%c0_22, %c0_23], %39 {strides = array<i32>} : memref<8x1xf32, #tpu.memory_space<vmem>>, vector<8x1xf32>,
    } else {
    }
    return
  }
  func.func @transform_0(%arg0: i32, %arg1: i32) -> (i32, i32) {
    %c0_i32 = arith.constant 0 : i32
    %c0_i32_0 = arith.constant 0 : i32
    return %arg0, %c0_i32 : i32, i32
  }
  func.func @transform_1(%arg0: i32, %arg1: i32) -> (i32, i32) {
    %c0_i32 = arith.constant 0 : i32
    %c0_i32_0 = arith.constant 0 : i32
    return %arg1, %c0_i32 : i32, i32
  }
  func.func @transform_2(%arg0: i32, %arg1: i32) -> (i32, i32) {
    %c0_i32 = arith.constant 0 : i32
    %c0_i32_0 = arith.constant 0 : i32
    return %arg0, %c0_i32 : i32, i32
  }
}

</mosaic_0001>

<bundles_post_ra>
// kernel: tpu_custom_call.1
= control target key start
LH: loop header
LB: loop body
LE: loop exit
PB: predicated region body
PF: predicated region fallthrough
CT: control target
= control target key end

     0   :  { %vm76_vm0 = vcmask 261120   ;;  %v137_v17 = vlaneseq  ;;  %vm15_vm2 = vcmask 7168   ;;  %v273_v20 = vmov -inf   ;;  %s337_s1 = inlined_call_operand.vmem [shape: bf16[128,32], index: 1, kind: input, shape index: {}]   ;;  %s338_s0 = inlined_call_operand.vmem [shape: bf16[8,32], index: 0, kind: input, shape index: {}]   ;;  %s339_s2 = inlined_call_operand.vmem [shape: f32[8,1], index: 2, kind: output, shape index: {}]  }
   0x1   :  { %v262_v0 = vld [vmem:[%s337_s1 + $0x38] sm:$0xff]  ;;  %v261_v2 = vld [vmem:[%s337_s1 + $0x30] sm:$0xff]  ;;  %v260_v4 = vld [vmem:[%s337_s1 + $0x28] sm:$0xff]  ;;  %16 = vst.msk [vmem:[#allocation2] sm:$0xff] %vm15_vm2, %v273_v20  ;;  %v274_v27 = vmov 0   ;;  %v275_v28 = vmov 0.0  }
   0x2   :  { %v102_v1 = vsel %vm76_vm0, %v262_v0, 0  ;;  %v99_v3 = vsel %vm76_vm0, %v261_v2, 0  ;;  %v96_v5 = vsel %vm76_vm0, %v260_v4, 0  ;;  %v259_v6 = vld [vmem:[%s337_s1 + $0x20] sm:$0xff]  ;;  %v258_v8 = vld [vmem:[%s337_s1 + $0x18] sm:$0xff]  ;;  %v257_v10 = vld [vmem:[%s337_s1 + $0x10] sm:$0xff]  ;;  %266 = vset.pattern.permute.xlu0 %v274_v27 }
   0x3   :  { %104 = vmatpush.bf16.xpose.msra.mxu0 %v102_v1  ;;  %v93_v7 = vsel %vm76_vm0, %v259_v6, 0  ;;  %v90_v9 = vsel %vm76_vm0, %v258_v8, 0  ;;  %v87_v11 = vsel %vm76_vm0, %v257_v10, 0  ;;  %v256_v12 = vld [vmem:[%s337_s1 + $0x8] sm:$0xff]  ;;  %v255_v14 = vld [vmem:[%s337_s1] sm:$0xff]  ;;  %v142_v18 = vand.u32 127, %v137_v17 }
   0x4   :  { %v84_v13 = vsel %vm76_vm0, %v256_v12, 0  ;;  %v81_v15 = vsel %vm76_vm0, %v255_v14, 0  ;;  %v19_v16 = vld [vmem:[%s338_s0] sm:$0xf]  ;;  %v138_v19 = vshrl.u32 %v137_v17, 7  ;;  %17 = vst.msk [vmem:[#allocation3] sm:$0xff] %vm15_vm2, %v275_v28 }
   0x5   :  { %vm155_vm4 = vcmp.ge.s32.totalorder %v142_v18, 16  ;;  %18 = vst.msk [vmem:[#allocation4] sm:$0xff] %vm15_vm2, %v275_v28 }
   0x6   :  { %vm146_vm1 = vcmp.eq.s32.totalorder %v142_v18, %v138_v19  ;;  %v153_v21 = vadd.s32 8, %v138_v19 }
   0x8   :  { %vm154_vm3 = vcmp.eq.s32.totalorder %v142_v18, %v153_v21  ;;  %v158_v29 = vld [vmem:[#allocation2] sm:$0xff] }
   0x9   :  { %vm156_vm5 = vmor %vm154_vm3, %vm155_vm4 }
   0xb   :  { %105 = vmatpush.bf16.xpose.msra.mxu0 %v99_v3  ;;  %v165_v39 = vld [vmem:[#allocation3] sm:$0xff] }
   0xc   :  { %v145_v43 = vld [vmem:[#allocation4] sm:$0xff] }
  0x13   :  { %106 = vmatpush.bf16.xpose.msra.mxu0 %v96_v5 }
  0x1b   :  { %107 = vmatpush.bf16.xpose.msra.mxu0 %v93_v7 }
  0x23   :  { %108 = vmatpush.bf16.xpose.msra.mxu0 %v90_v9 }
  0x2b   :  { %109 = vmatpush.bf16.xpose.msra.mxu0 %v87_v11 }
  0x33   :  { %110 = vmatpush.bf16.xpose.msra.mxu0 %v84_v13 }
  0x3b   :  { %111 = vmatpush.bf16.xpose.msra.mxu0 %v81_v15 }
  0x42   :  { %254 = vmatmul.msk.bf16.vlgmr.msra.gmra.mxu0 %vm76_vm0, %v19_v16 }
  0xbf   :  { %v113_v22 = vpop.f32.mrf.mxu0 }
  0xc0   :  { %v117_v23 = vmul.f32 5.0, %v113_v22 }
  0xc2   :  { %v157_v24 = vsel %vm156_vm5, -1e+30, %v117_v23  ;;  %v147_v25 = vsel %vm146_vm1, %v117_v23, 0.0 }
  0xc3   :  { %159 = vmax.xlane.f32.xlu0 %v157_v24 }
  0xc7   :  { %v115_v26 = vpop.f32.mrf.mxu0 }
 0x136   :  { %v160_v30 = vpop.xlane.xlu0 %159 }
 0x137   :  { %v161_v31 = vmax.f32 %v158_v29, %v160_v30 }
 0x139   :  { %v162_v32 = vsub.f32 %v158_v29, %v161_v31  ;;  %179 = vst.msk [vmem:[#allocation2] sm:$0xff] %vm15_vm2, %v161_v31  ;;  %169 = vperm.xlu0 %266, %v161_v31  }
 0x13b   :  { %v163_v37 = vmul.f32 1.442695, %v162_v32 }
 0x140   :  { %v209_v49 = vld [vmem:[#allocation2] sm:$0xff] }
 0x1ab   :  { %v170_v33 = vpop.permute.xlu0 %169 }
 0x1ac   :  { %v172_v34 = vsub.f32 %v157_v24, %v170_v33 }
 0x1ae   :  { %v173_v35 = vmul.f32 1.442695, %v172_v34 }
 0x1b0   :  { %267 = vpow2.f32 %v173_v35 }
 0x1b1   :  { %269 = vpow2.f32 %v163_v37 }
 0x1b6   :  { %v268_v36 = vpop.eup %267 }
 0x1b7   :  { %175 = vadd.xlane.f32.xlu1 %v268_v36  ;;  %v270_v38 = vpop.eup %269 }
 0x1b8   :  { %v166_v40 = vmul.f32 %v270_v38, %v165_v39 }
 0x1bf   :  { %148 = vadd.xlane.f32.xlu1 %v147_v25 }
 0x22a   :  { %v176_v41 = vpop.xlane.xlu1 %175 }
 0x22b   :  { %v177_v42 = vadd.f32 %v176_v41, %v166_v40 }
 0x22d   :  { %178 = vst.msk [vmem:[#allocation3] sm:$0xff] %vm15_vm2, %v177_v42 }
 0x232   :  { %v149_v44 = vpop.xlane.xlu1 %148 }
 0x233   :  { %v150_v45 = vadd.f32 %v149_v44, %v145_v43 }
 0x234   :  { %v210_v46 = vld [vmem:[#allocation3] sm:$0xff] }
 0x235   :  { %271 = vlog2.f32 %v210_v46  ;;  %152 = vst.msk [vmem:[#allocation4] sm:$0xff] %vm15_vm2, %v150_v45 }
 0x23b   :  { %v272_v47 = vpop.eup %271 }
 0x23c   :  { %v212_v48 = vmul.f32 0.6931472, %v272_v47  ;;  %v214_v51 = vld [vmem:[#allocation4] sm:$0xff] }
 0x23e   :  { %v213_v50 = vadd.f32 %v212_v48, %v209_v49 }
 0x240   :  { %v215_v52 = vsub.f32 %v213_v50, %v214_v51 }
 0x242   :  { %217 = vst.msk [vmem:[%s339_s2] sm:$0xff] %vm15_vm2, %v215_v52 }

</bundles_post_ra>
